<compile_context>
chip_gen: v7x
topology: tpu7x:2x2x1
jax: 0.10.0
libtpu: 0.0.40
codegen_flags: <defaults>
</compile_context>

<pallas_src>
import math
import functools

import jax
import jax.numpy as jnp
import numpy as np
from jax.experimental import pallas as pl
from jax.experimental.pallas import tpu as pltpu


# ------------------------------------------------------------------
# pe table construction (parameter setup, plain JAX — deterministic)
# ------------------------------------------------------------------
def make_pe_table(d_model: int, max_len: int) -> jnp.ndarray:
    pos = jnp.arange(max_len, dtype=jnp.float32)[:, None]                      # (max_len, 1)
    div = jnp.exp(
        jnp.arange(0, d_model, 2, dtype=jnp.float32) * (-math.log(10000.0) / d_model)
    )                                                                          # (d_model//2,)
    ang = pos * div                                                            # (max_len, d_model//2)
    # interleave: pe[:, 0::2] = sin, pe[:, 1::2] = cos
    pe = jnp.stack([jnp.sin(ang), jnp.cos(ang)], axis=-1).reshape(max_len, d_model)
    return pe                                                                  # (max_len, d_model)


# ------------------------------------------------------------------
# Pallas kernels
# ------------------------------------------------------------------
def pe_add_kernel(x_ref, pe_ref, o_ref, *, batch):
    # x_ref: (tS, B*D), pe_ref: (tS, D) -> broadcast over batch via lane tile.
    pe_wide = jnp.tile(pe_ref[...], (1, batch))          # (tS, B*D)
    o_ref[...] = x_ref[...] + pe_wide


def _mix32(u):
    """splitmix32-style avalanche on uint32 lanes (pure VPU ops)."""
    u = (u ^ (u >> 16)) * jnp.uint32(0x7FEB352D)
    u = (u ^ (u >> 15)) * jnp.uint32(0x846CA68B)
    u = u ^ (u >> 16)
    return u


def pe_add_dropout_kernel(seed_ref, x_ref, pe_ref, o_ref, *, p, batch, block_rows):
    # Training mode: (x + pe) then inverted dropout with keep-prob (1 - p).
    y = x_ref[...] + jnp.tile(pe_ref[...], (1, batch))   # (tS, B*D)

    # Counter-based RNG: hash(global element index, seed).  Using the global
    # index (via pl.program_id) guarantees a distinct mask in every tile.
    rows = jax.lax.broadcasted_iota(jnp.int32, y.shape, 0)
    cols = jax.lax.broadcasted_iota(jnp.int32, y.shape, 1)
    width = y.shape[1]
    gid = (pl.program_id(0) * block_rows + rows) * width + cols  # int32; wrap is fine for a hash
    seed_u = seed_ref[0].astype(jnp.uint32)
    bits = _mix32((gid.astype(jnp.uint32) * jnp.uint32(0x9E3779B9)) ^ seed_u)

    # Compare on the top 31 bits in signed int32 space (universally supported).
    r31 = (bits >> 1).astype(jnp.int32)                        # uniform in [0, 2^31)
    thresh = jnp.int32(min(int(p * (1 << 31)), (1 << 31) - 1))
    keep = r31 >= thresh                                        # P(keep) ~= 1 - p
    scale = jnp.float32(1.0 / (1.0 - p))
    o_ref[...] = jnp.where(keep, y * scale, jnp.zeros_like(y)).astype(o_ref.dtype)


# ------------------------------------------------------------------
# Wrapper
# ------------------------------------------------------------------
def _choose_tile_s(S, row_bytes, target_bytes=2 << 20):
    """Sequence-tile size: ~2 MiB per buffer, multiple of 8 sublanes."""
    if S * row_bytes <= target_bytes:
        return S
    t = max(8, (target_bytes // max(row_bytes, 1)) // 8 * 8)
    return int(min(t, S))


def positional_encoding_forward(x, pe_table, *, p=0.1, training=False, seed=0,
                                tile_s=None, donate_x=False):
    """x: (S, B, D); pe_table: (max_len, D).  Returns dropout(x + pe[:S])."""
    S, B, D = x.shape
    assert pe_table.ndim == 2 and pe_table.shape[1] == D and pe_table.shape[0] >= S
    assert 0.0 <= p < 1.0, "dropout prob must be in [0, 1)"

    BD = B * D
    x2 = x.reshape(S, BD)          # contiguous reshape -> no copy, lane-dense slab
    pe_s = pe_table[:S]            # (S, D)

    if tile_s is None:
        tile_s = _choose_tile_s(S, BD * x.dtype.itemsize)
    tile_s = int(tile_s)
    grid = (pl.cdiv(S, tile_s),)

    x_spec = pl.BlockSpec((tile_s, BD), lambda i: (i, 0))
    pe_spec = pl.BlockSpec((tile_s, D), lambda i: (i, 0))
    out_spec = pl.BlockSpec((tile_s, BD), lambda i: (i, 0))
    out_shape = jax.ShapeDtypeStruct((S, BD), x.dtype)

    # Sequence tiles are independent -> "parallel": v7x shards them over its two
    # TensorCores; harmless no-op on single-TC v5e/v6e.
    cparams = pltpu.CompilerParams(dimension_semantics=("parallel",))

    if not training:
        # NOTE: for eval, a plain XLA fused add would also hit HBM roofline; the
        # tiled Pallas version below is kept so both modes share one code path.
        y2 = pl.pallas_call(
            functools.partial(pe_add_kernel, batch=B),
            out_shape=out_shape,
            grid=grid,
            in_specs=[x_spec, pe_spec],
            out_specs=out_spec,
            compiler_params=cparams,
            input_output_aliases=({0: 0} if donate_x else {}),
        )(x2, pe_s)
    else:
        seed_arr = jnp.asarray([seed], dtype=jnp.int32)
        y2 = pl.pallas_call(
            functools.partial(pe_add_dropout_kernel, p=float(p), batch=B,
                              block_rows=tile_s),
            out_shape=out_shape,
            grid=grid,
            in_specs=[
                pl.BlockSpec(memory_space=pltpu.MemorySpace.SMEM),  # seed scalar
                x_spec,
                pe_spec,
            ],
            out_specs=out_spec,
            compiler_params=cparams,
            input_output_aliases=({1: 0} if donate_x else {}),
        )(seed_arr, x2, pe_s)

    return y2.reshape(S, B, D)


# ------------------------------------------------------------------
# Demo / correctness check
# ------------------------------------------------------------------
if __name__ == "__main__":
    P_DROP = 0.1
    B, D, MAX_LEN = 2, 32, 64
    pe_table = make_pe_table(D, MAX_LEN)

    def ref_add(xx):
        s = xx.shape[0]
        return np.asarray(xx) + np.asarray(pe_table[:s])[:, None, :]

    # --- case 1: small single-tile shape (S, B, D) = (8, 2, 32), eval mode ---
    S1 = 8
    x1 = jax.random.normal(jax.random.PRNGKey(0), (S1, B, D), dtype=jnp.float32)
    out_eval = jax.block_until_ready(
        positional_encoding_forward(x1, pe_table, p=P_DROP, training=False))
    np.testing.assert_allclose(np.asarray(out_eval), ref_add(x1), rtol=1e-6, atol=1e-6)

    # --- case 2: multi-tile grid (S=24, tile_s=8 -> grid of 3), eval mode ---
    S2 = 24
    x2 = jax.random.normal(jax.random.PRNGKey(1), (S2, B, D), dtype=jnp.float32)
    out_eval2 = jax.block_until_ready(
        positional_encoding_forward(x2, pe_table, p=P_DROP, training=False, tile_s=8))
    np.testing.assert_allclose(np.asarray(out_eval2), ref_add(x2), rtol=1e-6, atol=1e-6)

    # --- case 3: training mode (stochastic dropout, deterministic seed) ---
    out_train = jax.block_until_ready(
        positional_encoding_forward(x2, pe_table, p=P_DROP, training=True,
                                    seed=1234, tile_s=8))
    ot = np.asarray(out_train)
    ref2 = ref_add(x2)
    kept = ot != 0.0
    # Kept elements must equal ref * 1/(1-p); dropped elements are exactly 0.
    np.testing.assert_allclose(ot[kept], (ref2 / (1.0 - P_DROP))[kept],
                               rtol=1e-5, atol=1e-5)
    drop_frac = 1.0 - kept.mean()
    assert 0.01 < drop_frac < 0.3, f"unexpected dropout rate {drop_frac}"

    print("KERNEL_OK")
</pallas_src>

<mosaic_0001>
module attributes {stable_mosaic.version = 11 : i64} {
  func.func @pe_add_kernel(%arg0: i32, %arg1: memref<8x64xf32, #tpu.memory_space<vmem>>, %arg2: memref<8x32xf32, #tpu.memory_space<vmem>>, %arg3: memref<8x64xf32, #tpu.memory_space<vmem>>) attributes {dimension_semantics = [#tpu.dimension_semantics<parallel>], iteration_bounds = array<i64: 1>, scalar_prefetch = 0 : i64, scratch_operands = 0 : i64, tpu.core_type = #tpu.core_type<tc>, window_params = [{transform_indices = @transform_0, window_bounds = array<i64: 8, 64>}, {transform_indices = @transform_1, window_bounds = array<i64: 8, 32>}, {transform_indices = @transform_2, window_bounds = array<i64: 8, 64>}]} {
    %c0 = arith.constant 0 : index
    %c0_0 = arith.constant 0 : index
    %0 = vector.load %arg2[%c0, %c0_0] : memref<8x32xf32, #tpu.memory_space<vmem>>, vector<8x32xf32>
    %1 = tpu.concatenate %0, %0 in 1 : vector<8x32xf32>, vector<8x32xf32> -> vector<8x64xf32>
    %c0_1 = arith.constant 0 : index
    %c0_2 = arith.constant 0 : index
    %2 = vector.load %arg1[%c0_1, %c0_2] : memref<8x64xf32, #tpu.memory_space<vmem>>, vector<8x64xf32>
    %3 = arith.addf %2, %1 : vector<8x64xf32>
    %c0_3 = arith.constant 0 : index
    %c0_4 = arith.constant 0 : index
    %4 = vector.load %arg3[%c0_3, %c0_4] : memref<8x64xf32, #tpu.memory_space<vmem>>, vector<8x64xf32>
    tpu.vector_store %arg3[%c0_3, %c0_4], %3 {strides = array<i32>} : memref<8x64xf32, #tpu.memory_space<vmem>>, vector<8x64xf32>,
    return
  }
  func.func @transform_0(%arg0: i32) -> (i32, i32) {
    %c0_i32 = arith.constant 0 : i32
    %c0_i32_0 = arith.constant 0 : i32
    return %arg0, %c0_i32 : i32, i32
  }
  func.func @transform_1(%arg0: i32) -> (i32, i32) {
    %c0_i32 = arith.constant 0 : i32
    %c0_i32_0 = arith.constant 0 : i32
    return %arg0, %c0_i32 : i32, i32
  }
  func.func @transform_2(%arg0: i32) -> (i32, i32) {
    %c0_i32 = arith.constant 0 : i32
    %c0_i32_0 = arith.constant 0 : i32
    return %arg0, %c0_i32 : i32, i32
  }
}

</mosaic_0001>

<bundles_post_ra>
// kernel: tpu_custom_call.1
= control target key start
LH: loop header
LB: loop body
LE: loop exit
PB: predicated region body
PF: predicated region fallthrough
CT: control target
= control target key end

     0   :  { %7 = vsyncpa [#allocation3], 0  ;;  %s194_s0 = inlined_call_operand.hbm [shape: f32[8,64], index: 0, kind: input, shape index: {}]   ;;  %s195_s1 = inlined_call_operand.hbm [shape: f32[8,32], index: 1, kind: input, shape index: {}]   ;;  %s196_s2 = inlined_call_operand.hbm [shape: f32[8,64], index: 2, kind: output, shape index: {}]  }
   0x1   :  { %8 = vsyncpa [#allocation6], 0 }
   0x2   :  { %9 = vsyncpa [#allocation4], 0  ;;  %s139_s9 = smov [#allocation2]   ;;  %s140_s11 = smov [#allocation5]  }
   0x3   :  { %s16_s10 = sshll.u32 %s139_s9, 4  ;;  %s26_s12 = sshll.u32 %s140_s11, 4  ;;  %s17_s10 = int_to_ptr.vmem [resolvable:$true] %s16_s10  ;;  %s27_s12 = int_to_ptr.vmem [resolvable:$true] %s26_s12 }
   0x4   :  { %s67_s15 = scalar_lea.hbm %s194_s0, 128 }
   0x5   :  { %p68_p0 = scmp.ne.s32.totalorder %s194_s0, %s67_s15  ;;  %p71_p1 = scmp.lt.u32.totalorder %s67_s15, %s194_s0 }
   0x7   :  { %p73_p2 = pnand %p71_p1, %p68_p0 }
   0x9   :  { %76 = shalt.err (!%p73_p2)
}
   0xa   :  { %s77_s20 = scalar_lea.vmem %s17_s10, 128  ;;  %p82_p4 = scmp.lt.s32.totalorder %s17_s10, %s17_s10 }
   0xb   :  { %p78_p3 = scmp.ne.s32.totalorder %s17_s10, %s77_s20  ;;  %p83_p5 = scmp.lt.s32.totalorder %s77_s20, %s77_s20 }
   0xd   :  { %p84_p6 = por %p83_p5, %p82_p4 }
   0xf   :  { %p85_p7 = pnand %p84_p6, %p78_p3 }
  0x11   :  { %88 = shalt.err (!%p85_p7)
}
  0x12   :  { %19 = dma.hbm_to_vmem [thread:$0]  %s194_s0, 128, %s17_s10, [#allocation3]  }
  0x13   :  { %s89_s25 = scalar_lea.hbm %s195_s1, 128 }
  0x14   :  { %p90_p8 = scmp.ne.s32.totalorder %s195_s1, %s89_s25  ;;  %p93_p9 = scmp.lt.u32.totalorder %s89_s25, %s195_s1 }
  0x16   :  { %p95_p10 = pnand %p93_p9, %p90_p8 }
  0x18   :  { %98 = shalt.err (!%p95_p10)
}
  0x19   :  { %s99_s30 = scalar_lea.vmem %s27_s12, 128  ;;  %p104_p12 = scmp.lt.s32.totalorder %s27_s12, %s27_s12 }
  0x1a   :  { %p100_p11 = scmp.ne.s32.totalorder %s27_s12, %s99_s30  ;;  %p105_p13 = scmp.lt.s32.totalorder %s99_s30, %s99_s30 }
  0x1c   :  { %p106_p0 = por %p105_p13, %p104_p12 }
  0x1e   :  { %p107_p1 = pnand %p106_p0, %p100_p11 }
  0x20   :  { %110 = shalt.err (!%p107_p1)
}
  0x21   :  { %29 = dma.hbm_to_vmem [thread:$0]  %s195_s1, 128, %s27_s12, [#allocation6]  }
  0x22   :  { %133 = dma.done.wait [#allocation3], 128  }
  0x23   :  { %134 = vsyncadd [#allocation3], 4294967168 }
  0x24   :  { %135 = dma.done.wait [#allocation6], 128  }
  0x25   :  { %136 = vsyncadd [#allocation6], 4294967168  ;;  %v36_v0 = vld [vmem:[#allocation5] sm:$0xff]  ;;  %s141_s4 = smov 32   ;;  %vm41_vm0 = vcmask 261120   ;;  %v43_v1 = vld [vmem:[#allocation2] sm:$0xff] }
  0x26   :  { %38 = vrot.lane.b32.xlu0 %v36_v0, %s141_s4  ;;  %s142_s5 = smov [#allocation7]   ;;  %vm45_vm1 = vcmask 523264  }
  0x27   :  { %s53_s6 = sshll.u32 %s142_s5, 4  ;;  %s54_s6 = int_to_ptr.vmem [resolvable:$true] %s53_s6 }
  0x28   :  { %s111_s7 = scalar_lea.vmem %s54_s6, 128  ;;  %p116_p3 = scmp.lt.s32.totalorder %s54_s6, %s54_s6 }
  0x29   :  { %p112_p2 = scmp.ne.s32.totalorder %s54_s6, %s111_s7  ;;  %p117_p4 = scmp.lt.s32.totalorder %s111_s7, %s111_s7 }
  0x2b   :  { %p118_p5 = por %p117_p4, %p116_p3 }
  0x2d   :  { %p119_p6 = pnand %p118_p5, %p112_p2 }
  0x98   :  { %v39_v2 = vpop.permute.xlu0 %38 }
  0x99   :  { %v42_v3 = vsel %vm41_vm0, %v36_v0, %v39_v2 }
  0x9a   :  { %v44_v4 = vadd.f32 %v43_v1, %v42_v3 }
  0x9c   :  { %46 = vst.msk [vmem:[#allocation7] sm:$0xff] %vm45_vm1, %v44_v4 }
  0x9d   :  { %122 = shalt.err (!%p119_p6)
}
  0x9e   :  { %s123_s9 = scalar_lea.hbm %s196_s2, 128 }
  0x9f   :  { %p124_p7 = scmp.ne.s32.totalorder %s196_s2, %s123_s9  ;;  %p127_p8 = scmp.lt.u32.totalorder %s123_s9, %s196_s2 }
  0xa1   :  { %p129_p9 = pnand %p127_p8, %p124_p7 }
  0xa3   :  { %132 = shalt.err (!%p129_p9)
}
  0xa4   :  { %56 = dma.vmem_to_hbm [thread:$0]  %s54_s6, 128, %s196_s2, [#allocation4]  }
  0xa5   :  { %137 = dma.done.wait [#allocation4], 128  }
  0xa6   :  { %138 = vsyncadd [#allocation4], 4294967168 }
  0xa7   :  { %60 = vsyncpa [#allocation3], 1 }
  0xa8   :  { %61 = vsyncpa [#allocation6], 1 }
  0xa9   :  { %62 = vsyncpa [#allocation4], 1 }

</bundles_post_ra>
